<compile_context>
chip_gen: v5e
topology: v5e:2x2
jax: 0.10.0
libtpu: 0.0.40
codegen_flags: <defaults>
</compile_context>

<pallas_src>
import jax
import jax.numpy as jnp
from jax.experimental import pallas as pl
from jax.experimental.pallas import tpu as pltpu


def _full_spec(a):
    nd = a.ndim
    return pl.BlockSpec(a.shape, lambda g, _nd=nd: (0,) * _nd)


def _temporal_gnn_kernel(adj_ref, x_ref, mat_ref, vec_ref, out_ref):
    """One grid step = b_tile whole samples; everything is feature-major (F x R)."""
    c = mat_ref.shape[1]            # hidden width C (32)
    adj_t = adj_ref[...]            # (R, R) transposed block-diagonal normalized adjacency
    mx = x_ref[0]                   # (1, R) = (A_hat @ X)^T, graph mixing hoisted host-side

    # static slab slices (sublane-/lane-aligned, zero-cost views before load)
    wf1 = vec_ref[:, 0:1]           # (2C, 1) fused layer-1 weight (F_in == 1)
    bf1 = vec_ref[:, 1:2]           # (2C, 1) fused layer-1 bias
    bf2 = vec_ref[:, 2:3]           # (2C, 1) fused layer-2 bias
    ob = vec_ref[0:1, 3:4]          # (1, 1)  output bias
    wf2 = mat_ref[:2 * c, :]        # (2C, C) fused layer-2 weight
    ow = mat_ref[2 * c:2 * c + 1, :]  # (1, C) output Linear weight (row)

    def gate_act(g):
        # TGCN cell with H = 0: Z = sigmoid(.), H_tilde = tanh(.), H = (1-Z)*H_tilde; + ReLU
        z = jax.nn.sigmoid(g[:c, :])
        h_tilde = jnp.tanh(g[c:, :])
        return jnp.maximum((1.0 - z) * h_tilde, 0.0)

    # layer 1: F_in == 1 and A_hat @ X precomputed -> pure VPU outer product + bias
    h = gate_act(wf1 * mx + bf1)                                          # (C, R)

    # layer 2: adjacency first (C rows, not 2C), then the single fused feature matmul
    m = jnp.dot(h, adj_t, preferred_element_type=jnp.float32)             # (C, R)
    h = gate_act(jnp.dot(wf2, m, preferred_element_type=jnp.float32) + bf2)  # (C, R)

    # output Linear(C -> 1): lane-dense (1, R) row
    out_ref[0] = jnp.dot(ow, h, preferred_element_type=jnp.float32) + ob


def pack_params(params):
    """Host-side packing: fold each gate Linear into its GCN weight (exact by associativity),
    fuse z||h gates, transpose to feature-major, and collapse everything into two slabs."""
    def fuse(cw, cb, lw, lb):
        wz = cw[0] @ lw[0]                       # (F, C)
        wh = cw[2] @ lw[2]                       # (F, C)
        bz = cb[0] @ lw[0] + lb[0]               # (C,)
        bh = cb[2] @ lw[2] + lb[2]               # (C,)
        wf = jnp.concatenate([wz, wh], axis=1).T            # (2C, F)
        bf = jnp.concatenate([bz, bh], axis=0)[:, None]     # (2C, 1)
        return wf, bf

    wf1, bf1 = fuse(params["cw1"], params["cb1"], params["lw1"], params["lb1"])  # (2C,1),(2C,1)
    wf2, bf2 = fuse(params["cw2"], params["cb2"], params["lw2"], params["lb2"])  # (2C,C),(2C,1)
    assert wf1.shape[1] == 1, "layer 1 packing assumes F_in == 1 (A3TGCN2(1, 32, 1))"
    c = wf2.shape[1]

    # matrix slab: rows 0:2C = fused layer-2 weight, row 2C = output Linear row, pad to 8-mult
    mat = jnp.zeros((2 * c + 8, c), jnp.float32)
    mat = mat.at[:2 * c, :].set(wf2)
    mat = mat.at[2 * c, :].set(params["ow"][:, 0])
    # column slab: col0 = wf1, col1 = bf1, col2 = bf2, [0,3] = output bias
    vec = jnp.zeros((2 * c, 8), jnp.float32)
    vec = vec.at[:, 0].set(wf1[:, 0])
    vec = vec.at[:, 1].set(bf1[:, 0])
    vec = vec.at[:, 2].set(bf2[:, 0])
    vec = vec.at[0, 3].set(params["ob"][0, 0])
    return mat, vec


def temporal_gnn(x4, adj, params, *, num_blocks=None):
    assert x4.shape[-1] == 1, "A3TGCN2 with periods == 1"
    x = x4[..., 0]                           # (B, N, F_in)
    B, N, F_in = x.shape
    if num_blocks is None:
        # Single block keeps R = B*N stacked rows lane-dense and avoids grid-step overhead
        # on single-TC v5e/v6e; only split across v7x's two TensorCores when each block
        # still has >= 256 stacked rows of work.
        num_blocks = 2 if (B % 2 == 0 and (B * N) // 2 >= 256) else 1
    assert B % num_blocks == 0
    b_tile = B // num_blocks
    R = b_tile * N                           # stacked rows per grid step

    # layer 1's graph mixing hoisted here (layer 1 is linear in X): per-sample A_hat @ X
    ax = jnp.einsum("nm,bmf->bnf", adj, x)                    # (B, N, F_in)
    x_t = jnp.transpose(ax.reshape(num_blocks, R, F_in), (0, 2, 1))   # (nb, F_in, R)

    # block-diagonal A_hat keeps samples separate while the layer-2 mix runs on all R rows;
    # transposed because the kernel right-multiplies feature-major activations.
    # TODO(synk): for large N / b_tile replace the kron with a per-sample (F*b_tile, N) @ adj
    #             matmul and add a K-tiled 'arbitrary' grid axis + vmem_limit_bytes (v7x VMEM
    #             is 64 MiB); at R=64 the dense (R,R) block is a few KB so kron is neutral.
    adj_t = jnp.kron(jnp.eye(b_tile, dtype=adj.dtype), adj).T   # (R, R)

    mat, vec = pack_params(params)
    # TODO(synk): optional bf16 weight/activation cast (2x MXU rate on v6e/v7x) would need the
    #             correctness tolerance relaxed; kept f32 to match the 1e-5 reference check.

    in_specs = [_full_spec(adj_t),
                pl.BlockSpec((1, F_in, R), lambda g: (g, 0, 0)),
                _full_spec(mat),
                _full_spec(vec)]

    out = pl.pallas_call(
        _temporal_gnn_kernel,
        out_shape=jax.ShapeDtypeStruct((num_blocks, 1, R), jnp.float32),
        grid=(num_blocks,),
        in_specs=in_specs,
        out_specs=pl.BlockSpec((1, 1, R), lambda g: (g, 0, 0)),
        compiler_params=pltpu.CompilerParams(dimension_semantics=("parallel",)),
    )(adj_t, x_t, mat, vec)

    return out.reshape(B, N, 1)


def init_params(key, f_in=1, c=32):
    # Deterministic synthetic parameters with the shapes implied by
    # A3TGCN2(1,32,1), A3TGCN2(32,32,1), Linear(32,1).
    ks = jax.random.split(key, 10)
    s = lambda k, shape: 0.1 * jax.random.normal(k, shape, jnp.float32)
    return {
        # layer 1: 3 gates (z, r, h): GCNConv(1->32) weight/bias, effective Linear(32->32)
        "cw1": s(ks[0], (3, f_in, c)),
        "cb1": s(ks[1], (3, c)),
        "lw1": s(ks[2], (3, c, c)),   # first half of the 2C->C gate linears (H=0 exact)
        "lb1": s(ks[3], (3, c)),
        # layer 2: GCNConv(32->32) per gate, Linear(32->32) per gate
        "cw2": s(ks[4], (3, c, c)),
        "cb2": s(ks[5], (3, c)),
        "lw2": s(ks[6], (3, c, c)),
        "lb2": s(ks[7], (3, c)),
        # output Linear(32 -> 1)
        "ow": s(ks[8], (c, 1)),
        "ob": s(ks[9], (1, 1)),
    }


def ring_gcn_adjacency(n):
    # TODO(synk): the reference forward never supplies edge_index; we use a fixed
    # deterministic ring graph and bake GCN normalization (A+I, symmetric) as dense.
    a = jnp.zeros((n, n), jnp.float32)
    idx = jnp.arange(n)
    a = a.at[idx, (idx + 1) % n].set(1.0)
    a = a.at[(idx + 1) % n, idx].set(1.0)
    a = a + jnp.eye(n, dtype=jnp.float32)
    dinv = 1.0 / jnp.sqrt(jnp.sum(a, axis=1))
    return a * dinv[:, None] * dinv[None, :]


def ref_forward(x4, adj, p):
    # Pure-JAX reference of the same semantics (raw per-gate weights), for correctness.
    x = x4[..., 0]

    def tgcn(xin, cw, cb, lw, lb):
        ax = jnp.einsum("ij,bjf->bif", adj, xin)

        def gate(g):
            return (ax @ cw[g] + cb[g]) @ lw[g] + lb[g]

        z = jax.nn.sigmoid(gate(0))
        ht = jnp.tanh(gate(2))
        return (1.0 - z) * ht

    h = jax.nn.relu(tgcn(x, p["cw1"], p["cb1"], p["lw1"], p["lb1"]))
    h = jax.nn.relu(tgcn(h, p["cw2"], p["cb2"], p["lw2"], p["lb2"]))
    return h @ p["ow"] + p["ob"]


if __name__ == "__main__":
    B, N, F_IN, P, C = 4, 16, 1, 1, 32
    key = jax.random.PRNGKey(0)
    kx, kp = jax.random.split(key)
    x = jax.random.normal(kx, (B, N, F_IN, P), jnp.float32)   # (batch, nodes, feat, periods)
    params = init_params(kp, F_IN, C)
    adj = ring_gcn_adjacency(N)

    out = jax.block_until_ready(temporal_gnn(x, adj, params))
    ref = ref_forward(x, adj, params)

    assert out.shape == (B, N, 1)
    assert jnp.allclose(out, ref, atol=1e-5, rtol=1e-5)
    print("KERNEL_OK")
</pallas_src>

<mosaic_0001>
module attributes {stable_mosaic.version = 11 : i64} {
  func.func @_temporal_gnn_kernel(%arg0: i32, %arg1: memref<64x64xf32, #tpu.memory_space<vmem>>, %arg2: memref<1x1x64xf32, #tpu.memory_space<vmem>>, %arg3: memref<72x32xf32, #tpu.memory_space<vmem>>, %arg4: memref<64x8xf32, #tpu.memory_space<vmem>>, %arg5: memref<1x1x64xf32, #tpu.memory_space<vmem>>) attributes {dimension_semantics = [#tpu.dimension_semantics<parallel>], iteration_bounds = array<i64: 1>, scalar_prefetch = 0 : i64, scratch_operands = 0 : i64, tpu.core_type = #tpu.core_type<tc>, window_params = [{pipeline_mode = #tpu.pipeline_mode<synchronous>, transform_indices = @transform_0, window_bounds = array<i64: 64, 64>}, {transform_indices = @transform_1, window_bounds = array<i64: 1, 1, 64>}, {pipeline_mode = #tpu.pipeline_mode<synchronous>, transform_indices = @transform_2, window_bounds = array<i64: 72, 32>}, {pipeline_mode = #tpu.pipeline_mode<synchronous>, transform_indices = @transform_3, window_bounds = array<i64: 64, 8>}, {transform_indices = @transform_4, window_bounds = array<i64: 1, 1, 64>}]} {
    %c0 = arith.constant 0 : index
    %c0_0 = arith.constant 0 : index
    %0 = vector.load %arg1[%c0, %c0_0] : memref<64x64xf32, #tpu.memory_space<vmem>>, vector<64x64xf32>
    %c0_1 = arith.constant 0 : index
    %c0_2 = arith.constant 0 : index
    %c0_3 = arith.constant 0 : index
    %1 = vector.load %arg2[%c0_1, %c0_2, %c0_3] : memref<1x1x64xf32, #tpu.memory_space<vmem>>, vector<1x1x64xf32>
    %2 = vector.shape_cast %1 : vector<1x1x64xf32> to vector<1x64xf32>
    %c0_4 = arith.constant 0 : index
    %c0_5 = arith.constant 0 : index
    %3 = vector.load %arg4[%c0_4, %c0_5] : memref<64x8xf32, #tpu.memory_space<vmem>>, vector<64x1xf32>
    %c0_6 = arith.constant 0 : index
    %c1 = arith.constant 1 : index
    %4 = vector.load %arg4[%c0_6, %c1] : memref<64x8xf32, #tpu.memory_space<vmem>>, vector<64x1xf32>
    %c0_7 = arith.constant 0 : index
    %c2 = arith.constant 2 : index
    %5 = vector.load %arg4[%c0_7, %c2] : memref<64x8xf32, #tpu.memory_space<vmem>>, vector<64x1xf32>
    %c0_8 = arith.constant 0 : index
    %c3 = arith.constant 3 : index
    %6 = vector.load %arg4[%c0_8, %c3] : memref<64x8xf32, #tpu.memory_space<vmem>>, vector<1x1xf32>
    %c0_9 = arith.constant 0 : index
    %c0_10 = arith.constant 0 : index
    %7 = vector.load %arg3[%c0_9, %c0_10] : memref<72x32xf32, #tpu.memory_space<vmem>>, vector<64x32xf32>
    %c64 = arith.constant 64 : index
    %c0_11 = arith.constant 0 : index
    %8 = vector.load %arg3[%c64, %c0_11] : memref<72x32xf32, #tpu.memory_space<vmem>>, vector<1x32xf32>
    %9 = vector.broadcast %3 : vector<64x1xf32> to vector<64x64xf32>
    %10 = vector.broadcast %2 : vector<1x64xf32> to vector<64x64xf32>
    %11 = arith.mulf %9, %10 : vector<64x64xf32>
    %12 = vector.broadcast %4 : vector<64x1xf32> to vector<64x64xf32>
    %13 = arith.addf %11, %12 : vector<64x64xf32>
    %14 = vector.extract_strided_slice %13 {offsets = [0, 0], sizes = [32, 64], strides = [1, 1]} : vector<64x64xf32> to vector<32x64xf32>
    %15 = arith.negf %14 : vector<32x64xf32>
    %16 = math.exp %15 : vector<32x64xf32>
    %cst = arith.constant 1.000000e+00 : f32
    %17 = vector.broadcast %cst : f32 to vector<32x64xf32>
    %18 = arith.addf %17, %16 : vector<32x64xf32>
    %19 = arith.divf %17, %18 : vector<32x64xf32>
    %20 = vector.extract_strided_slice %13 {offsets = [32, 0], sizes = [32, 64], strides = [1, 1]} : vector<64x64xf32> to vector<32x64xf32>
    %21 = math.tanh %20 : vector<32x64xf32>
    %cst_12 = arith.constant 1.000000e+00 : f32
    %22 = vector.broadcast %cst_12 : f32 to vector<32x64xf32>
    %23 = arith.subf %22, %19 : vector<32x64xf32>
    %24 = arith.mulf %23, %21 : vector<32x64xf32>
    %cst_13 = arith.constant 0.000000e+00 : f32
    %25 = vector.broadcast %cst_13 : f32 to vector<32x64xf32>
    %26 = arith.maximumf %24, %25 : vector<32x64xf32>
    %cst_14 = arith.constant dense<0.000000e+00> : vector<32x64xf32>
    %27 = tpu.matmul %26, %0, %cst_14 {dimension_numbers = #tpu.dot_dimension_numbers<[1], [0], [0], [1], [0, 0, 1, 1], [], []>} : vector<32x64xf32>, vector<64x64xf32>, vector<32x64xf32> -> vector<32x64xf32>
    %cst_15 = arith.constant dense<0.000000e+00> : vector<64x64xf32>
    %28 = tpu.matmul %7, %27, %cst_15 {dimension_numbers = #tpu.dot_dimension_numbers<[1], [0], [0], [1], [0, 0, 1, 1], [], []>} : vector<64x32xf32>, vector<32x64xf32>, vector<64x64xf32> -> vector<64x64xf32>
    %29 = vector.broadcast %5 : vector<64x1xf32> to vector<64x64xf32>
    %30 = arith.addf %28, %29 : vector<64x64xf32>
    %31 = vector.extract_strided_slice %30 {offsets = [0, 0], sizes = [32, 64], strides = [1, 1]} : vector<64x64xf32> to vector<32x64xf32>
    %32 = arith.negf %31 : vector<32x64xf32>
    %33 = math.exp %32 : vector<32x64xf32>
    %cst_16 = arith.constant 1.000000e+00 : f32
    %34 = vector.broadcast %cst_16 : f32 to vector<32x64xf32>
    %35 = arith.addf %34, %33 : vector<32x64xf32>
    %36 = arith.divf %34, %35 : vector<32x64xf32>
    %37 = vector.extract_strided_slice %30 {offsets = [32, 0], sizes = [32, 64], strides = [1, 1]} : vector<64x64xf32> to vector<32x64xf32>
    %38 = math.tanh %37 : vector<32x64xf32>
    %cst_17 = arith.constant 1.000000e+00 : f32
    %39 = vector.broadcast %cst_17 : f32 to vector<32x64xf32>
    %40 = arith.subf %39, %36 : vector<32x64xf32>
    %41 = arith.mulf %40, %38 : vector<32x64xf32>
    %cst_18 = arith.constant 0.000000e+00 : f32
    %42 = vector.broadcast %cst_18 : f32 to vector<32x64xf32>
    %43 = arith.maximumf %41, %42 : vector<32x64xf32>
    %cst_19 = arith.constant dense<0.000000e+00> : vector<1x64xf32>
    %44 = tpu.matmul %8, %43, %cst_19 {dimension_numbers = #tpu.dot_dimension_numbers<[1], [0], [0], [1], [0, 0, 1, 1], [], []>} : vector<1x32xf32>, vector<32x64xf32>, vector<1x64xf32> -> vector<1x64xf32>
    %45 = vector.broadcast %6 : vector<1x1xf32> to vector<1x64xf32>
    %46 = arith.addf %44, %45 : vector<1x64xf32>
    %c0_20 = arith.constant 0 : index
    %c0_21 = arith.constant 0 : index
    %c0_22 = arith.constant 0 : index
    %47 = vector.load %arg5[%c0_20, %c0_21, %c0_22] : memref<1x1x64xf32, #tpu.memory_space<vmem>>, vector<1x1x64xf32>
    %48 = vector.shape_cast %47 : vector<1x1x64xf32> to vector<1x64xf32>
    %49 = vector.shape_cast %46 : vector<1x64xf32> to vector<1x1x64xf32>
    tpu.vector_store %arg5[%c0_20, %c0_21, %c0_22], %49 {strides = array<i32>} : memref<1x1x64xf32, #tpu.memory_space<vmem>>, vector<1x1x64xf32>,
    return
  }
  func.func @transform_0(%arg0: i32) -> (i32, i32) {
    %c0_i32 = arith.constant 0 : i32
    %c0_i32_0 = arith.constant 0 : i32
    %c0_i32_1 = arith.constant 0 : i32
    return %c0_i32, %c0_i32_0 : i32, i32
  }
  func.func @transform_1(%arg0: i32) -> (i32, i32, i32) {
    %c0_i32 = arith.constant 0 : i32
    %c0_i32_0 = arith.constant 0 : i32
    %c0_i32_1 = arith.constant 0 : i32
    return %arg0, %c0_i32, %c0_i32_0 : i32, i32, i32
  }
  func.func @transform_2(%arg0: i32) -> (i32, i32) {
    %c0_i32 = arith.constant 0 : i32
    %c0_i32_0 = arith.constant 0 : i32
    %c0_i32_1 = arith.constant 0 : i32
    return %c0_i32, %c0_i32_0 : i32, i32
  }
  func.func @transform_3(%arg0: i32) -> (i32, i32) {
    %c0_i32 = arith.constant 0 : i32
    %c0_i32_0 = arith.constant 0 : i32
    %c0_i32_1 = arith.constant 0 : i32
    return %c0_i32, %c0_i32_0 : i32, i32
  }
  func.func @transform_4(%arg0: i32) -> (i32, i32, i32) {
    %c0_i32 = arith.constant 0 : i32
    %c0_i32_0 = arith.constant 0 : i32
    %c0_i32_1 = arith.constant 0 : i32
    return %arg0, %c0_i32, %c0_i32_0 : i32, i32, i32
  }
}

</mosaic_0001>

<bundles_post_ra>
// kernel: tpu_custom_call.1
= control target key start
LH: loop header
LB: loop body
LE: loop exit
PB: predicated region body
PF: predicated region fallthrough
CT: control target
= control target key end

     0   :  { %v634_v2 = vmov 0   ;;  %s901_s0 = inlined_call_operand.vmem [shape: f32[64,64], index: 0, kind: input, shape index: {}]   ;;  %s902_s1 = inlined_call_operand.vmem [shape: f32[1,1,64], index: 1, kind: input, shape index: {}]   ;;  %s903_s2 = inlined_call_operand.vmem [shape: f32[72,32], index: 2, kind: input, shape index: {}]   ;;  %s904_s3 = inlined_call_operand.vmem [shape: f32[64,8], index: 3, kind: input, shape index: {}]   ;;  %s905_s4 = inlined_call_operand.hbm [shape: f32[1,1,64], index: 4, kind: output, shape index: {}]  }
   0x1   :  { %v667_v0 = vld [vmem:[%s904_s3 + $0x8] sm:$0xff]  ;;  %v672_v1 = vld [vmem:[%s904_s3] sm:$0xff]  ;;  %546 = vset.pattern.permute.xlu1 %v634_v2  ;;  %544 = vset.pattern.permute.xlu0 %v634_v2 }
   0x2   :  { %52 = vperm.xlu1 %546, %v667_v0   ;;  %47 = vperm.xlu0 %544, %v672_v1  }
   0x3   :  { %9 = vsyncpa [#allocation3], 0  ;;  %v635_v3 = vmov 1   ;;  %v680_v4 = vld [vmem:[%s904_s3 + $0x18] sm:$0xff]  ;;  %v688_v5 = vld [vmem:[%s904_s3 + $0x10] sm:$0xff]  ;;  %vm228_vm12 = vcmask 523264  }
   0x4   :  { %547 = vset.pattern.permute.xlu2 %v635_v3  ;;  %v694_v6 = vld [vmem:[%s904_s3 + $0x20] sm:$0xff]  ;;  %v701_v7 = vld [vmem:[%s904_s3 + $0x28] sm:$0xff]  ;;  %v707_v8 = vld [vmem:[%s904_s3 + $0x38] sm:$0xff]  ;;  %s638_s13 = smov [#allocation2]   ;;  %s497_s17 = sshll.u32 %s905_s4, 4  ;;  %s498_s17 = int_to_ptr.hbm [resolvable:$true] %s497_s17 }
   0x5   :  { %101 = vperm.xlu2 %547, %v667_v0   ;;  %v716_v9 = vld [vmem:[%s904_s3 + $0x30] sm:$0xff]  ;;  %v723_v11 = vld [vmem:[%s902_s1] ss:$0 sm:$0xff]  ;;  %v25_v15 = vld [vmem:[%s901_s0 + $0x38] sm:$0xff]  ;;  %s495_s14 = sshll.u32 %s638_s13, 4  ;;  %s496_s14 = int_to_ptr.vmem [resolvable:$true] %s495_s14 }
   0x6   :  { %249 = vmatpush.msra.mxu0 %v25_v15  ;;  %527 = vmatpush.msra.mxu2 %v25_v15  ;;  %v24_v17 = vld [vmem:[%s901_s0 + $0x30] sm:$0xff]  ;;  %v23_v19 = vld [vmem:[%s901_s0 + $0x28] sm:$0xff]  ;;  %v22_v21 = vld [vmem:[%s901_s0 + $0x20] sm:$0xff] }
   0x7   :  { %v21_v24 = vld [vmem:[%s901_s0 + $0x18] sm:$0xff]  ;;  %v20_v28 = vld [vmem:[%s901_s0 + $0x10] sm:$0xff]  ;;  %v19_v32 = vld [vmem:[%s901_s0 + $0x8] sm:$0xff] }
   0x8   :  { %250 = vmatpush.msra.mxu0 %v24_v17  ;;  %528 = vmatpush.msra.mxu2 %v24_v17  ;;  %v18_v36 = vld [vmem:[%s901_s0] sm:$0xff] }
   0xa   :  { %62 = vperm.xlu1 %546, %v680_v4   ;;  %545 = vset.pattern.permute.xlu0 %v635_v3 }
   0xb   :  { %97 = vperm.xlu0 %545, %v672_v1   ;;  %251 = vmatpush.msra.mxu0 %v23_v19 }
   0xc   :  { %529 = vmatpush.msra.mxu2 %v23_v19 }
   0xd   :  { %109 = vperm.xlu2 %547, %v680_v4   ;;  %252 = vmatpush.msra.mxu0 %v22_v21 }
   0xe   :  { %530 = vmatpush.msra.mxu2 %v22_v21 }
   0xf   :  { %253 = vmatpush.msra.mxu0 %v21_v24 }
  0x10   :  { %531 = vmatpush.msra.mxu2 %v21_v24 }
  0x11   :  { %254 = vmatpush.msra.mxu0 %v20_v28 }
  0x12   :  { %57 = vperm.xlu1 %546, %v688_v5   ;;  %532 = vmatpush.msra.mxu2 %v20_v28 }
  0x13   :  { %548 = vset.pattern.permute.xlu0 %v634_v2  ;;  %255 = vmatpush.msra.mxu0 %v19_v32 }
  0x14   :  { %67 = vperm.xlu0 %548, %v694_v6   ;;  %533 = vmatpush.msra.mxu2 %v19_v32 }
  0x15   :  { %105 = vperm.xlu2 %547, %v688_v5   ;;  %256 = vmatpush.msra.mxu0 %v18_v36 }
  0x16   :  { %534 = vmatpush.msra.mxu2 %v18_v36 }
  0x1a   :  { %549 = vset.pattern.permute.xlu1 %v635_v3 }
  0x1b   :  { %113 = vperm.xlu1 %549, %v694_v6  }
  0x1c   :  { %553 = vset.pattern.permute.xlu0 %v635_v3 }
  0x1d   :  { %550 = vset.pattern.permute.xlu2 %v634_v2  ;;  %125 = vperm.xlu0 %553, %v707_v8  }
  0x1e   :  { %72 = vperm.xlu2 %550, %v701_v7  }
  0x23   :  { %551 = vset.pattern.permute.xlu1 %v634_v2 }
  0x24   :  { %82 = vperm.xlu1 %551, %v707_v8  }
  0x26   :  { %552 = vset.pattern.permute.xlu2 %v635_v3 }
  0x27   :  { %117 = vperm.xlu2 %552, %v701_v7  }
  0x2c   :  { %77 = vperm.xlu1 %551, %v716_v9  }
  0x2f   :  { %121 = vperm.xlu2 %552, %v716_v9  }
  0x5f   :  { %v102_v10 = vpop.permute.xlu2 %101 }
  0x67   :  { %v110_v12 = vpop.permute.xlu2 %109 }
  0x6f   :  { %v106_v25 = vpop.permute.xlu2 %105 }
  0x74   :  { %v53_v13 = vpop.permute.xlu1 %52  ;;  %v48_v14 = vpop.permute.xlu0 %47 }
  0x75   :  { %v89_v16 = vmul.f32 %v723_v11, %v53_v13  ;;  %v88_v22 = vmul.f32 %v723_v11, %v48_v14 }
  0x77   :  { %v129_v18 = vadd.f32 %v102_v10, %v89_v16 }
  0x78   :  { %v73_v39 = vpop.permute.xlu2 %72 }
  0x79   :  { %v507_v20 = vmul.f32 -1.442695, %v129_v18  ;;  %v93_v50 = vmul.f32 %v723_v11, %v73_v39 }
  0x7b   :  { %560 = vpow2.f32 %v507_v20 }
  0x7c   :  { %v63_v23 = vpop.permute.xlu1 %62 }
  0x7d   :  { %v91_v26 = vmul.f32 %v723_v11, %v63_v23  ;;  %v98_v27 = vpop.permute.xlu0 %97 }
  0x7e   :  { %v128_v29 = vadd.f32 %v98_v27, %v88_v22 }
  0x7f   :  { %v131_v30 = vadd.f32 %v110_v12, %v91_v26 }
  0x80   :  { %v506_v31 = vmul.f32 -1.442695, %v128_v29 }
  0x81   :  { %v561_v33 = vpop.eup %560  ;;  %v509_v34 = vmul.f32 -1.442695, %v131_v30  ;;  %v118_v52 = vpop.permute.xlu2 %117 }
  0x82   :  { %v749_v35 = vadd.f32 1.0, %v561_v33  ;;  %562 = vpow2.f32 %v506_v31  ;;  %v133_v57 = vadd.f32 %v118_v52, %v93_v50 }
  0x83   :  { %564 = vpow2.f32 %v509_v34 }
  0x84   :  { %566 = vrcp.f32 %v749_v35  ;;  %v58_v37 = vpop.permute.xlu1 %57  ;;  %vm172_vm0 = vweird.f32 %v749_v35  ;;  %v176_v62 = vand.u32 2147483647, %v749_v35  ;;  %v178_v10 = vand.u32 2147483648, %v749_v35 }
  0x85   :  { %v90_v38 = vmul.f32 %v723_v11, %v58_v37 }
  0x86   :  { %v68_v48 = vpop.permute.xlu0 %67  ;;  %v179_v29 = vor.u32 1.1754944e-38, %v178_v10  ;;  %vm177_vm11 = vcmp.eq.f32.partialorder %v176_v62, 8.507059e+37 }
  0x87   :  { %v130_v40 = vadd.f32 %v106_v25, %v90_v38  ;;  %v92_v53 = vmul.f32 %v723_v11, %v68_v48 }
  0x88   :  { %v563_v41 = vpop.eup %562 }
  0x89   :  { %v565_v42 = vpop.eup %564  ;;  %v148_v43 = vadd.f32 1.0, %v563_v41  ;;  %v508_v44 = vmul.f32 -1.442695, %v130_v40 }
  0x8a   :  { %v756_v45 = vpop.eup %566  ;;  %v151_v46 = vadd.f32 1.0, %v565_v42 }
  0x8b   :  { %v168_v47 = vmul.f32 %v756_v45, %v749_v35  ;;  %568 = vrcp.f32 %v148_v43  ;;  %v161_v3 = vand.u32 2147483647, %v148_v43  ;;  %v163_v12 = vand.u32 2147483648, %v148_v43 }
  0x8c   :  { %570 = vrcp.f32 %v151_v46  ;;  %v208_v14 = vand.u32 2147483648, %v151_v46  ;;  %vm173_vm1 = vweird.f32 %v756_v45  ;;  %vm157_vm4 = vweird.f32 %v148_v43 }
  0x8d   :  { %572 = vpow2.f32 %v508_v44  ;;  %v114_v49 = vpop.permute.xlu1 %113  ;;  %v169_v51 = vsub.f32 1.0, %v168_v47  ;;  %v206_v22 = vand.u32 2147483647, %v151_v46  ;;  %vm776_vm5 = vmor %vm172_vm0, %vm173_vm1  ;;  %v164_v25 = vor.u32 1.1754944e-38, %v163_v12  ;;  %v122_v44 = vpop.permute.xlu2 %121 }
  0x8e   :  { %v132_v61 = vadd.f32 %v114_v49, %v92_v53  ;;  %vm202_vm7 = vweird.f32 %v151_v46  ;;  %vm162_vm8 = vcmp.eq.f32.partialorder %v161_v3, 8.507059e+37  ;;  %v209_v32 = vor.u32 1.1754944e-38, %v208_v14 }
  0x8f   :  { %v170_v58 = vmul.f32 %v756_v45, %v169_v51  ;;  %v126_v16 = vpop.permute.xlu0 %125  ;;  %vm207_vm10 = vcmp.eq.f32.partialorder %v206_v22, 8.507059e+37  ;;  %v636_v3 = vmov 2   ;;  %vm302_vm1 = vcmask 261120  }
  0x90   :  { %554 = vset.pattern.permute.xlu1 %v636_v3  ;;  %556 = vset.pattern.permute.xlu0 %v636_v3 }
  0x91   :  { %v569_v54 = vpop.eup %568  ;;  %v171_v18 = vadd.f32 %v756_v45, %v170_v58  ;;  %283 = vperm.xlu1 %554, %v680_v4   ;;  %275 = vperm.xlu0 %556, %v667_v0   ;;  %v36_v0 = vld [vmem:[%s903_s2] sm:$0xff] }
  0x92   :  { %v571_v55 = vpop.eup %570  ;;  %v153_v56 = vmul.f32 %v569_v54, %v148_v43  ;;  %vm158_vm2 = vweird.f32 %v569_v54  ;;  %555 = vset.pattern.permute.xlu2 %v636_v3 }
  0x93   :  { %v573_v59 = vpop.eup %572  ;;  %v198_v60 = vmul.f32 %v571_v55, %v151_v46  ;;  %vm203_vm3 = vweird.f32 %v571_v55  ;;  %vm159_vm6 = vmor %vm157_vm4, %vm158_vm2  ;;  %v175_v28 = vsel %vm776_vm5, %v756_v45, %v171_v18  ;;  %279 = vperm.xlu2 %555, %v688_v5   ;;  %v37_v5 = vld [vmem:[%s903_s2 + $0x8] sm:$0xff] }
  0x94   :  { %v154_v63 = vsub.f32 1.0, %v153_v56  ;;  %v765_v2 = vadd.f32 1.0, %v573_v59  ;;  %vm204_vm9 = vmor %vm202_vm7, %vm203_vm3  ;;  %v180_v38 = vsel %vm177_vm11, %v179_v29, %v175_v28 }
  0x95   :  { %v199_v13 = vsub.f32 1.0, %v198_v60  ;;  %v217_v47 = vsub.f32 1.0, %v180_v38 }
  0x96   :  { %574 = vrcp.f32 %v765_v2  ;;  %v83_v15 = vpop.permute.xlu1 %82  ;;  %v155_v17 = vmul.f32 %v569_v54, %v154_v63  ;;  %v193_v51 = vand.u32 2147483648, %v765_v2  ;;  %v191_v53 = vand.u32 2147483647, %v765_v2 }
  0x97   :  { %576 = vtanh.f32 %v132_v61  ;;  %v95_v19 = vmul.f32 %v723_v11, %v83_v15  ;;  %v200_v20 = vmul.f32 %v571_v55, %v199_v13  ;;  %vm187_vm14 = vweird.f32 %v765_v2  ;;  %v43_v13 = vld [vmem:[%s903_s2 + $0x38] sm:$0xff] }
  0x98   :  { %578 = vtanh.f32 %v133_v57  ;;  %v156_v21 = vadd.f32 %v569_v54, %v155_v17  ;;  %v194_v57 = vor.u32 1.1754944e-38, %v193_v51  ;;  %vm192_vm0 = vcmp.eq.f32.partialorder %v191_v53, 8.507059e+37 }
  0x99   :  { %v135_v24 = vadd.f32 %v126_v16, %v95_v19  ;;  %v201_v26 = vadd.f32 %v571_v55, %v200_v20  ;;  %271 = vperm.xlu1 %554, %v672_v1   ;;  %287 = vperm.xlu0 %556, %v694_v6   ;;  %v40_v1 = vld [vmem:[%s903_s2 + $0x20] sm:$0xff]  ;;  %v41_v6 = vld [vmem:[%s903_s2 + $0x28] sm:$0xff]  ;;  %v637_v51 = vmov 3  }
  0x9a   :  { %v160_v27 = vsel %vm159_vm6, %v569_v54, %v156_v21 }
  0x9b   :  { %580 = vtanh.f32 %v135_v24  ;;  %v165_v30 = vsel %vm162_vm8, %v164_v25, %v160_v27  ;;  %v205_v31 = vsel %vm204_vm9, %v571_v55, %v201_v26  ;;  %299 = vperm.xlu2 %555, %v707_v8   ;;  %v42_v8 = vld [vmem:[%s903_s2 + $0x30] sm:$0xff] }
  0x9c   :  { %v575_v33 = vpop.eup %574  ;;  %v216_v34 = vsub.f32 1.0, %v165_v30  ;;  %v210_v37 = vsel %vm207_vm10, %v209_v32, %v205_v31 }
  0x9d   :  { %v577_v35 = vpop.eup %576  ;;  %v183_v36 = vmul.f32 %v575_v33, %v765_v2  ;;  %v219_v46 = vsub.f32 1.0, %v210_v37  ;;  %vm188_vm13 = vweird.f32 %v575_v33 }
  0x9e   :  { %v579_v39 = vpop.eup %578  ;;  %v78_v40 = vpop.permute.xlu1 %77  ;;  %v220_v41 = vmul.f32 %v577_v35, %v216_v34  ;;  %vm189_vm15 = vmor %vm187_vm14, %vm188_vm13 }
  0x9f   :  { %v94_v42 = vmul.f32 %v723_v11, %v78_v40  ;;  %v184_v43 = vsub.f32 1.0, %v183_v36  ;;  %v221_v55 = vmul.f32 %v579_v39, %v217_v47 }
  0xa0   :  { %v224_v45 = vmax.f32 %v220_v41, 0.0 }
  0xa1   :  { %v581_v48 = vpop.eup %580  ;;  %v134_v49 = vadd.f32 %v122_v44, %v94_v42  ;;  %v185_v50 = vmul.f32 %v575_v33, %v184_v43  ;;  %v225_v59 = vmax.f32 %v221_v55, 0.0  ;;  %295 = vperm.xlu1 %554, %v716_v9   ;;  %v39_v9 = vld [vmem:[%s903_s2 + $0x18] sm:$0xff]  ;;  %558 = vset.pattern.permute.xlu0 %v637_v51 }
  0xa2   :  { %510 = vmatmul.msk.f32.vlgmr.msra.gmra.mxu0 %vm228_vm12, %v224_v45  ;;  %v223_v52 = vmul.f32 %v581_v48, %v219_v46  ;;  %v35_v48 = vld [vmem:[%s904_s3] sm:$0x1] }
  0xa3   :  { %582 = vtanh.f32 %v134_v49  ;;  %v186_v54 = vadd.f32 %v575_v33, %v185_v50  ;;  %291 = vperm.xlu2 %555, %v701_v7   ;;  %v38_v7 = vld [vmem:[%s903_s2 + $0x10] sm:$0xff] }
  0xa4   :  { %v227_v11 = vmax.f32 %v223_v52, 0.0 }
  0xa5   :  { %v190_v56 = vsel %vm189_vm15, %v575_v33, %v186_v54 }
  0xa6   :  { %513 = vmatmul.msk.f32.vlgmr.msra.gmra.mxu2 %vm228_vm12, %v227_v11  ;;  %v195_v58 = vsel %vm192_vm0, %v194_v57, %v190_v56 }
  0xa7   :  { %v218_v61 = vsub.f32 1.0, %v195_v58 }
  0xa9   :  { %v583_v60 = vpop.eup %582  ;;  %557 = vset.pattern.permute.xlu1 %v637_v51 }
  0xaa   :  { %511 = vmatmul.msk.f32.gmra.mxu0 %vm228_vm12, %v225_v59  ;;  %v222_v62 = vmul.f32 %v583_v60, %v218_v61  ;;  %462 = vperm.xlu1 %557, %v35_v48  }
  0xac   :  { %v226_v63 = vmax.f32 %v222_v62, 0.0 }
  0xb2   :  { %512 = vmatmul.msk.f32.gmra.mxu0 %vm228_vm12, %v226_v63 }
  0xed   :  { %v280_v24 = vpop.permute.xlu2 %279 }
  0xf5   :  { %v300_v39 = vpop.permute.xlu2 %299 }
  0xfd   :  { %v292_v55 = vpop.permute.xlu2 %291 }
 0x103   :  { %v284_v14 = vpop.permute.xlu1 %283  ;;  %v276_v18 = vpop.permute.xlu0 %275 }
 0x10b   :  { %v272_v16 = vpop.permute.xlu1 %271  ;;  %v288_v44 = vpop.permute.xlu0 %287 }
 0x113   :  { %v296_v11 = vpop.permute.xlu1 %295 }
 0x11c   :  { %v463_v48 = vpop.permute.xlu1 %462 }
 0x11f   :  { %v258_v2 = vpop.f32.mrf.mxu0 }
 0x127   :  { %v261_v10 = vpop.f32.mrf.mxu0 }
 0x129   :  { %v267_v12 = vpop.f32.mrf.mxu2 }
 0x12a   :  { %339 = vmatpush.msra.mxu1 %v267_v12  ;;  %535 = vmatpush.msra.mxu3 %v267_v12 }
 0x12f   :  { %v264_v4 = vpop.f32.mrf.mxu0 }
 0x130   :  { %340 = vmatpush.msra.mxu1 %v264_v4  ;;  %536 = vmatpush.msra.mxu3 %v264_v4 }
 0x132   :  { %341 = vmatpush.msra.mxu1 %v261_v10  ;;  %537 = vmatpush.msra.mxu3 %v261_v10 }
 0x134   :  { %342 = vmatpush.msra.mxu1 %v258_v2  ;;  %538 = vmatpush.msra.mxu3 %v258_v2 }
 0x135   :  { %514 = vmatmul.msk.f32.vlgmr.msra.gmra.mxu1 %vm302_vm1, %v36_v0  ;;  %518 = vmatmul.msk.f32.vlgmr.msra.gmra.mxu3 %vm302_vm1, %v40_v1 }
 0x13d   :  { %515 = vmatmul.msk.f32.gmra.mxu1 %vm302_vm1, %v37_v5  ;;  %519 = vmatmul.msk.f32.gmra.mxu3 %vm302_vm1, %v41_v6 }
 0x145   :  { %516 = vmatmul.msk.f32.gmra.mxu1 %vm302_vm1, %v38_v7  ;;  %520 = vmatmul.msk.f32.gmra.mxu3 %vm302_vm1, %v42_v8 }
 0x14d   :  { %517 = vmatmul.msk.f32.gmra.mxu1 %vm302_vm1, %v39_v9  ;;  %521 = vmatmul.msk.f32.gmra.mxu3 %vm302_vm1, %v43_v13 }
 0x1b2   :  { %v344_v15 = vpop.f32.mrf.mxu1 }
 0x1b3   :  { %v345_v17 = vadd.f32 %v344_v15, %v272_v16 }
 0x1b5   :  { %v522_v19 = vmul.f32 -1.442695, %v345_v17 }
 0x1b7   :  { %584 = vpow2.f32 %v522_v19 }
 0x1b8   :  { %v356_v23 = vpop.f32.mrf.mxu3 }
 0x1b9   :  { %v357_v52 = vadd.f32 %v356_v23, %v288_v44 }
 0x1ba   :  { %v347_v20 = vpop.f32.mrf.mxu1 }
 0x1bb   :  { %v348_v21 = vadd.f32 %v347_v20, %v276_v18 }
 0x1bd   :  { %v523_v22 = vmul.f32 -1.442695, %v348_v21  ;;  %v585_v27 = vpop.eup %584 }
 0x1be   :  { %v834_v31 = vadd.f32 1.0, %v585_v27 }
 0x1bf   :  { %586 = vpow2.f32 %v523_v22 }
 0x1c0   :  { %v359_v32 = vpop.f32.mrf.mxu3  ;;  %vm389_vm2 = vweird.f32 %v834_v31  ;;  %v393_v58 = vand.u32 2147483647, %v834_v31  ;;  %v395_v62 = vand.u32 2147483648, %v834_v31 }
 0x1c1   :  { %v360_v2 = vadd.f32 %v359_v32, %v292_v55 }
 0x1c2   :  { %v350_v25 = vpop.f32.mrf.mxu1 }
 0x1c3   :  { %v351_v26 = vadd.f32 %v350_v25, %v280_v24 }
 0x1c5   :  { %v587_v28 = vpop.eup %586  ;;  %v524_v29 = vmul.f32 -1.442695, %v351_v26 }
 0x1c6   :  { %v832_v30 = vadd.f32 1.0, %v587_v28  ;;  %v396_v28 = vor.u32 1.1754944e-38, %v395_v62 }
 0x1c7   :  { %588 = vpow2.f32 %v524_v29 }
 0x1c8   :  { %590 = vrcp.f32 %v832_v30  ;;  %v362_v41 = vpop.f32.mrf.mxu3  ;;  %vm404_vm7 = vweird.f32 %v832_v30  ;;  %v410_v6 = vand.u32 2147483648, %v832_v30  ;;  %v408_v9 = vand.u32 2147483647, %v832_v30 }
 0x1c9   :  { %592 = vrcp.f32 %v834_v31  ;;  %v363_v3 = vadd.f32 %v362_v41, %v296_v11 }
 0x1ca   :  { %v353_v33 = vpop.f32.mrf.mxu1  ;;  %v411_v22 = vor.u32 1.1754944e-38, %v410_v6  ;;  %vm409_vm14 = vcmp.eq.f32.partialorder %v408_v9, 8.507059e+37 }
 0x1cb   :  { %v354_v34 = vadd.f32 %v353_v33, %v284_v14 }
 0x1cd   :  { %v589_v35 = vpop.eup %588  ;;  %v525_v36 = vmul.f32 -1.442695, %v354_v34 }
 0x1ce   :  { %v382_v37 = vadd.f32 1.0, %v589_v35  ;;  %v838_v38 = vpop.eup %590 }
 0x1cf   :  { %594 = vpow2.f32 %v525_v36  ;;  %v840_v40 = vpop.eup %592  ;;  %v400_v42 = vmul.f32 %v838_v38, %v832_v30  ;;  %vm405_vm5 = vweird.f32 %v838_v38 }
 0x1d0   :  { %596 = vrcp.f32 %v382_v37  ;;  %v385_v45 = vmul.f32 %v840_v40, %v834_v31  ;;  %v365_v59 = vpop.f32.mrf.mxu3  ;;  %v423_v10 = vand.u32 2147483647, %v382_v37  ;;  %v425_v12 = vand.u32 2147483648, %v382_v37  ;;  %vm874_vm10 = vmor %vm404_vm7, %vm405_vm5 }
 0x1d1   :  { %v401_v50 = vsub.f32 1.0, %v400_v42  ;;  %vm419_vm4 = vweird.f32 %v382_v37  ;;  %v366_v1 = vadd.f32 %v365_v59, %v300_v39  ;;  %vm390_vm8 = vweird.f32 %v840_v40 }
 0x1d2   :  { %v386_v54 = vsub.f32 1.0, %v385_v45  ;;  %vm424_vm9 = vcmp.eq.f32.partialorder %v423_v10, 8.507059e+37  ;;  %v426_v16 = vor.u32 1.1754944e-38, %v425_v12  ;;  %vm886_vm12 = vmor %vm389_vm2, %vm390_vm8  ;;  %vm394_vm2 = vcmp.eq.f32.partialorder %v393_v58, 8.507059e+37 }
 0x1d3   :  { %v402_v57 = vmul.f32 %v838_v38, %v401_v50 }
 0x1d4   :  { %v387_v61 = vmul.f32 %v840_v40, %v386_v54 }
 0x1d5   :  { %v595_v43 = vpop.eup %594  ;;  %v403_v0 = vadd.f32 %v838_v38, %v402_v57 }
 0x1d6   :  { %v597_v46 = vpop.eup %596  ;;  %v846_v47 = vadd.f32 1.0, %v595_v43  ;;  %v388_v13 = vadd.f32 %v840_v40, %v387_v61 }
 0x1d7   :  { %v415_v49 = vmul.f32 %v597_v46, %v382_v37  ;;  %vm420_vm3 = vweird.f32 %v597_v46  ;;  %v407_v20 = vsel %vm874_vm10, %v838_v38, %v403_v0 }
 0x1d8   :  { %598 = vrcp.f32 %v846_v47  ;;  %vm860_vm6 = vmor %vm419_vm4, %vm420_vm3  ;;  %v440_v15 = vand.u32 2147483648, %v846_v47  ;;  %v438_v19 = vand.u32 2147483647, %v846_v47  ;;  %vm434_vm13 = vweird.f32 %v846_v47 }
 0x1d9   :  { %v416_v53 = vsub.f32 1.0, %v415_v49  ;;  %600 = vtanh.f32 %v357_v52  ;;  %v392_v25 = vsel %vm886_vm12, %v840_v40, %v388_v13  ;;  %v412_v27 = vsel %vm409_vm14, %v411_v22, %v407_v20 }
 0x1da   :  { %602 = vtanh.f32 %v363_v3  ;;  %v441_v26 = vor.u32 1.1754944e-38, %v440_v15  ;;  %vm439_vm0 = vcmp.eq.f32.partialorder %v438_v19, 8.507059e+37  ;;  %v397_v33 = vsel %vm394_vm2, %v396_v28, %v392_v25 }
 0x1db   :  { %v417_v56 = vmul.f32 %v597_v46, %v416_v53  ;;  %604 = vtanh.f32 %v366_v1  ;;  %v449_v35 = vsub.f32 1.0, %v412_v27  ;;  %v448_v39 = vsub.f32 1.0, %v397_v33 }
 0x1dc   :  { %606 = vtanh.f32 %v360_v2  ;;  %vm488_vm3 = vcmask 516096  }
 0x1dd   :  { %v418_v60 = vadd.f32 %v597_v46, %v417_v56 }
 0x1de   :  { %v599_v63 = vpop.eup %598 }
 0x1df   :  { %v430_v4 = vmul.f32 %v599_v63, %v846_v47  ;;  %v422_v8 = vsel %vm860_vm6, %v597_v46, %v418_v60  ;;  %v601_v14 = vpop.eup %600  ;;  %vm435_vm11 = vweird.f32 %v599_v63  ;;  %v44_v47 = vld [vmem:[%s903_s2 + $0x40] sm:$0x1] }
 0x1e0   :  { %v427_v21 = vsel %vm424_vm9, %v426_v16, %v422_v8  ;;  %vm436_vm15 = vmor %vm434_vm13, %vm435_vm11  ;;  %v603_v31 = vpop.eup %602  ;;  %v452_v44 = vmul.f32 %v601_v14, %v448_v39 }
 0x1e1   :  { %v431_v7 = vsub.f32 1.0, %v430_v4  ;;  %v450_v30 = vsub.f32 1.0, %v427_v21  ;;  %v605_v36 = vpop.eup %604 }
 0x1e2   :  { %v607_v41 = vpop.eup %606  ;;  %v456_v46 = vmax.f32 %v452_v44, 0.0 }
 0x1e3   :  { %v432_v18 = vmul.f32 %v599_v63, %v431_v7  ;;  %v454_v38 = vmul.f32 %v603_v31, %v450_v30  ;;  %v453_v42 = vmul.f32 %v607_v41, %v449_v35 }
 0x1e5   :  { %v433_v24 = vadd.f32 %v599_v63, %v432_v18  ;;  %v458_v43 = vmax.f32 %v454_v38, 0.0  ;;  %v457_v45 = vmax.f32 %v453_v42, 0.0 }
 0x1e7   :  { %v437_v29 = vsel %vm436_vm15, %v599_v63, %v433_v24 }
 0x1e8   :  { %v442_v32 = vsel %vm439_vm0, %v441_v26, %v437_v29 }
 0x1e9   :  { %v451_v34 = vsub.f32 1.0, %v442_v32 }
 0x1eb   :  { %v455_v37 = vmul.f32 %v605_v36, %v451_v34 }
 0x1ed   :  { %v459_v40 = vmax.f32 %v455_v37, 0.0 }
 0x1ef   :  { %480 = vmatpush.msrb.mxu2 %v459_v40 }
 0x1f1   :  { %481 = vmatpush.msrb.mxu2 %v458_v43 }
 0x1f3   :  { %482 = vmatpush.msrb.mxu2 %v457_v45 }
 0x1f5   :  { %483 = vmatpush.msrb.mxu2 %v456_v46 }
 0x1f6   :  { %526 = vmatmul.msk.f32.vlgmr.msrb.gmra.mxu2 %vm302_vm1, %v44_v47 }
 0x279   :  { %v485_v49 = vpop.f32.mrf.mxu2 }
 0x27a   :  { %v486_v50 = vadd.f32 %v485_v49, %v463_v48 }
 0x27c   :  { %489 = vst.msk [vmem:[#allocation2] sm:$0x1] %vm488_vm3, %v486_v50 }
 0x27d   :  { %500 = dma.vmem_to_hbm [thread:$0]  %s496_s14, 16, %s498_s17, [#allocation3]  }
 0x27e   :  { %632 = dma.done.wait [#allocation3], 16  }
 0x27f   :  { %633 = vsyncadd [#allocation3], 4294967280 }
 0x280   :  { %505 = vsyncpa [#allocation3], 1 }

</bundles_post_ra>
